<compile_context>
chip_gen: v7x
topology: tpu7x:2x2x1
jax: 0.10.0
libtpu: 0.0.40
codegen_flags: <defaults>
</compile_context>

<pallas_src>
import jax
import jax.numpy as jnp
from jax.experimental import pallas as pl
from jax.experimental.pallas import tpu as pltpu

BN_EPS = 1e-5
HIDDEN = 100                    # logical hidden width (PyTorch module)
OUT_DIM = 52                    # logical output width (PyTorch module)
HIDDEN_PAD = 128                # lane-dense hidden width
GRIDLESS_MAX_B = 4096           # whole-batch-in-VMEM cap (~6 MiB resident, safe on v7x 64 MiB)
BATCH_TILE = 512                # gridded tile: >=512 rows ~ 85% of HBM roofline
VMEM_LIMIT = 32 * 1024 * 1024   # explicit scoped VMEM (v5e default is only 16 MiB)


# ----------------------------------------------------------------------------
# Gridless path: whole batch resident in VMEM (small / moderate B).
# ----------------------------------------------------------------------------
def _fused_kernel(exp_ref, jaw_ref, we_ref, wj_ref, ge_ref, bte_ref,
                  gj_ref, btj_ref, wo_ref, bo_ref, out_ref):
    def branch(x, w_ref, g_ref, bt_ref):
        w = w_ref[...]
        h = jnp.dot(x.astype(w.dtype), w, preferred_element_type=jnp.float32)
        # Training-mode BatchNorm fused into per-feature scale/shift.
        # Two independent reductions (mean, E[h^2]); var clamped at 0 so f32
        # cancellation can't feed a negative into rsqrt.
        mean = jnp.mean(h, axis=0, keepdims=True)
        mean_sq = jnp.mean(h * h, axis=0, keepdims=True)
        var = jnp.maximum(mean_sq - mean * mean, 0.0)
        scale = g_ref[...] * jax.lax.rsqrt(var + BN_EPS)   # EUP rsqrt
        shift = bt_ref[...] - mean * scale
        return jnp.maximum(h * scale + shift, 0.0)          # 1 mul + 1 add + relu

    hsum = (branch(exp_ref[...], we_ref, ge_ref, bte_ref)
            + branch(jaw_ref[...], wj_ref, gj_ref, btj_ref))
    wo = wo_ref[...]
    out_ref[...] = (jnp.dot(hsum.astype(wo.dtype), wo,
                            preferred_element_type=jnp.float32) + bo_ref[...])


def _forward_fused(exp, jaw, packed):
    B = exp.shape[0]
    vmem = pl.BlockSpec(memory_space=pltpu.MemorySpace.VMEM)
    args = (exp, jaw, packed["we"], packed["wj"], packed["ge"], packed["bte"],
            packed["gj"], packed["btj"], packed["wo"], packed["bo"])
    return pl.pallas_call(
        _fused_kernel,
        out_shape=jax.ShapeDtypeStruct((B, OUT_DIM), jnp.float32),
        in_specs=[vmem] * len(args),
        out_specs=vmem,
        compiler_params=pltpu.CompilerParams(vmem_limit_bytes=VMEM_LIMIT),
    )(*args)


# ----------------------------------------------------------------------------
# Gridded path: two-pass full-batch BatchNorm for large B.
# ----------------------------------------------------------------------------
def _forward_gridded(exp, jaw, packed, tile):
    B, dim_exp = exp.shape
    dim_jaw = jaw.shape[1]
    HP = HIDDEN_PAD
    grid = (pl.cdiv(B, tile),)

    def const(shape):  # weights & per-feature params stay VMEM-resident
        return pl.BlockSpec(shape, lambda i: (0, 0))

    # ---- pass 1: per-feature sum / sum-of-squares of [h_exp | h_jaw] ----
    def stats_kernel(exp_ref, jaw_ref, we_ref, wj_ref, stats_ref):
        i = pl.program_id(0)

        @pl.when(i == 0)
        def _():
            stats_ref[...] = jnp.zeros_like(stats_ref)

        we = we_ref[...]
        wj = wj_ref[...]
        he = jnp.dot(exp_ref[...].astype(we.dtype), we,
                     preferred_element_type=jnp.float32)
        hj = jnp.dot(jaw_ref[...].astype(wj.dtype), wj,
                     preferred_element_type=jnp.float32)
        h = jnp.concatenate([he, hj], axis=1)              # (tile, 2*HP)
        # Mask padded tail rows (block may overrun B); no linear bias, so a
        # masked row contributes exactly zero to both sums.
        rows = i * tile + jax.lax.broadcasted_iota(jnp.int32, (tile, 1), 0)
        h = jnp.where(rows < B, h, 0.0)
        s = jnp.sum(h, axis=0, keepdims=True)
        ss = jnp.sum(h * h, axis=0, keepdims=True)
        stats_ref[...] += jnp.concatenate([s, ss], axis=0)

    stats = pl.pallas_call(
        stats_kernel,
        out_shape=jax.ShapeDtypeStruct((2, 2 * HP), jnp.float32),
        grid=grid,
        in_specs=[
            pl.BlockSpec((tile, dim_exp), lambda i: (i, 0)),
            pl.BlockSpec((tile, dim_jaw), lambda i: (i, 0)),
            const((dim_exp, HP)),
            const((dim_jaw, HP)),
        ],
        out_specs=pl.BlockSpec((2, 2 * HP), lambda i: (0, 0)),
        compiler_params=pltpu.CompilerParams(
            dimension_semantics=("arbitrary",),
            vmem_limit_bytes=VMEM_LIMIT),
    )(exp, jaw, packed["we"], packed["wj"])

    # Tiny (1, 256) per-feature math: fold BN into one scale/shift.
    mean = stats[0:1] / B
    var = jnp.maximum(stats[1:2] / B - mean * mean, 0.0)
    g_cat = jnp.concatenate([packed["ge"], packed["gj"]], axis=1)
    bt_cat = jnp.concatenate([packed["bte"], packed["btj"]], axis=1)
    scale = g_cat * jax.lax.rsqrt(var + BN_EPS)
    shift = bt_cat - mean * scale

    # ---- pass 2: recompute h per tile, normalize + ReLU, add, final Linear ----
    def out_kernel(exp_ref, jaw_ref, we_ref, wj_ref, scale_ref, shift_ref,
                   wo_ref, bo_ref, out_ref):
        we = we_ref[...]
        wj = wj_ref[...]
        he = jnp.dot(exp_ref[...].astype(we.dtype), we,
                     preferred_element_type=jnp.float32)
        hj = jnp.dot(jaw_ref[...].astype(wj.dtype), wj,
                     preferred_element_type=jnp.float32)
        he = jnp.maximum(he * scale_ref[:, :HP] + shift_ref[:, :HP], 0.0)
        hj = jnp.maximum(hj * scale_ref[:, HP:] + shift_ref[:, HP:], 0.0)
        hsum = he + hj
        wo = wo_ref[...]
        out_ref[...] = (jnp.dot(hsum.astype(wo.dtype), wo,
                                preferred_element_type=jnp.float32)
                        + bo_ref[...])

    return pl.pallas_call(
        out_kernel,
        out_shape=jax.ShapeDtypeStruct((B, OUT_DIM), jnp.float32),
        grid=grid,
        in_specs=[
            pl.BlockSpec((tile, dim_exp), lambda i: (i, 0)),
            pl.BlockSpec((tile, dim_jaw), lambda i: (i, 0)),
            const((dim_exp, HP)),
            const((dim_jaw, HP)),
            const((1, 2 * HP)),
            const((1, 2 * HP)),
            const((HP, OUT_DIM)),
            const((1, OUT_DIM)),
        ],
        out_specs=pl.BlockSpec((tile, OUT_DIM), lambda i: (i, 0)),
        compiler_params=pltpu.CompilerParams(
            dimension_semantics=("parallel",),   # v7x: shard batch across 2 TCs
            vmem_limit_bytes=VMEM_LIMIT),
    )(exp, jaw, packed["we"], packed["wj"], scale, shift,
      packed["wo"], packed["bo"])


def expmodel2_forward(exp, jaw, packed, *, use_grid=None, batch_tile=BATCH_TILE):
    B = exp.shape[0]
    if B < 2:
        # PyTorch BatchNorm1d in train mode rejects batch size 1.
        raise ValueError("ExpModel2 (training-mode BatchNorm) needs batch > 1")
    if use_grid is None:
        use_grid = B > GRIDLESS_MAX_B
    if use_grid:
        return _forward_gridded(exp, jaw, packed, batch_tile)
    return _forward_fused(exp, jaw, packed)


# ----------------------------------------------------------------------------
# Parameters
# ----------------------------------------------------------------------------
def init_params(key, dim_exp, dim_jaw, hidden=HIDDEN, out_dim=OUT_DIM):
    """Logical (unpadded) parameters; linear weights stored as (in, out)."""
    ks = jax.random.split(key, 6)
    scale = 0.05
    return {
        "we": scale * jax.random.normal(ks[0], (dim_exp, hidden), jnp.float32),
        "be": scale * jax.random.normal(ks[1], (1, hidden), jnp.float32),
        "ge": jnp.ones((1, hidden), jnp.float32),    # BN gamma init = 1
        "bte": jnp.zeros((1, hidden), jnp.float32),  # BN beta  init = 0
        "wj": scale * jax.random.normal(ks[2], (dim_jaw, hidden), jnp.float32),
        "bj": scale * jax.random.normal(ks[3], (1, hidden), jnp.float32),
        "gj": jnp.ones((1, hidden), jnp.float32),
        "btj": jnp.zeros((1, hidden), jnp.float32),
        "wo": scale * jax.random.normal(ks[4], (hidden, out_dim), jnp.float32),
        "bo": scale * jax.random.normal(ks[5], (1, out_dim), jnp.float32),
    }


def pack_params(p, *, matmul_dtype=jnp.float32):
    """Pad hidden to 128 lanes; drop the branch Linear biases (BN cancels them).

    Padded hidden lanes carry gamma = beta = 0 so they stay exactly 0 through
    BN/ReLU and through the (zero-padded) final weight. Matmul weights may be
    packed bf16 (activations are cast at the dot); BN params stay f32 so all
    elementwise math is f32 on every generation (v5e has no bf16 VPU).
    """
    H, HP = HIDDEN, HIDDEN_PAD

    def pad_w(w):
        out = jnp.zeros((w.shape[0], HP), matmul_dtype)
        return out.at[:, :H].set(w.astype(matmul_dtype))

    def pad_row(r):
        return jnp.zeros((1, HP), jnp.float32).at[:, :H].set(r)

    wo = jnp.zeros((HP, OUT_DIM), matmul_dtype).at[:H, :].set(
        p["wo"].astype(matmul_dtype))
    return {
        "we": pad_w(p["we"]), "wj": pad_w(p["wj"]),
        "ge": pad_row(p["ge"]), "bte": pad_row(p["bte"]),
        "gj": pad_row(p["gj"]), "btj": pad_row(p["btj"]),
        "wo": wo, "bo": p["bo"].astype(jnp.float32),
    }


def reference_forward(exp, jaw, p):
    """Plain-JAX reference matching PyTorch ExpModel2 in train() mode."""
    def branch(x, w, b, g, bt):
        h = x @ w + b
        mean = jnp.mean(h, axis=0, keepdims=True)
        var = jnp.mean((h - mean) ** 2, axis=0, keepdims=True)  # biased var
        h = (h - mean) / jnp.sqrt(var + BN_EPS) * g + bt
        return jnp.maximum(h, 0.0)

    h = branch(exp, p["we"], p["be"], p["ge"], p["bte"]) + \
        branch(jaw, p["wj"], p["bj"], p["gj"], p["btj"])
    return h @ p["wo"] + p["bo"]


if __name__ == "__main__":
    DIM_EXP, DIM_JAW = 16, 8
    key = jax.random.PRNGKey(0)
    k_params, k1, k2, k3, k4 = jax.random.split(key, 5)
    params = init_params(k_params, DIM_EXP, DIM_JAW)
    packed_f32 = pack_params(params)

    # --- small-shape demo (gridless fused path), f32; B multiple of 8 fills sublanes
    B_SMALL = 8
    exp_s = jax.random.normal(k1, (B_SMALL, DIM_EXP), jnp.float32)
    jaw_s = jax.random.normal(k2, (B_SMALL, DIM_JAW), jnp.float32)
    out_s = jax.block_until_ready(expmodel2_forward(exp_s, jaw_s, packed_f32))
    ref_s = reference_forward(exp_s, jaw_s, params)
    assert out_s.shape == (B_SMALL, OUT_DIM)
    assert jnp.allclose(out_s, ref_s, atol=5e-4, rtol=5e-4), "fused path mismatch"

    # --- gridded two-pass-BN path (forced; auto-selected for B > 4096).
    #     B deliberately not a multiple of the 512-row tile to exercise masking.
    B_BIG = 1037
    exp_b = jax.random.normal(k3, (B_BIG, DIM_EXP), jnp.float32)
    jaw_b = jax.random.normal(k4, (B_BIG, DIM_JAW), jnp.float32)
    out_b = jax.block_until_ready(
        expmodel2_forward(exp_b, jaw_b, packed_f32, use_grid=True))
    ref_b = reference_forward(exp_b, jaw_b, params)
    assert out_b.shape == (B_BIG, OUT_DIM)
    assert jnp.allclose(out_b, ref_b, atol=1e-3, rtol=1e-3), "gridded path mismatch"

    # --- bf16 matmul operands (half the weight/activation DMA, native MXU rate);
    #     BN / elementwise math stays f32, so only matmul rounding differs.
    packed_bf16 = pack_params(params, matmul_dtype=jnp.bfloat16)
    out_h = jax.block_until_ready(expmodel2_forward(exp_s, jaw_s, packed_bf16))
    assert jnp.allclose(out_h, ref_s, atol=5e-2, rtol=5e-2), "bf16 path mismatch"

    print("KERNEL_OK")
</pallas_src>

<mosaic_0001>
module attributes {stable_mosaic.version = 11 : i64} {
  func.func @_fused_kernel(%arg0: memref<8x16xf32, #tpu.memory_space<vmem>>, %arg1: memref<8x8xf32, #tpu.memory_space<vmem>>, %arg2: memref<16x128xf32, #tpu.memory_space<vmem>>, %arg3: memref<8x128xf32, #tpu.memory_space<vmem>>, %arg4: memref<1x128xf32, #tpu.memory_space<vmem>>, %arg5: memref<1x128xf32, #tpu.memory_space<vmem>>, %arg6: memref<1x128xf32, #tpu.memory_space<vmem>>, %arg7: memref<1x128xf32, #tpu.memory_space<vmem>>, %arg8: memref<128x52xf32, #tpu.memory_space<vmem>>, %arg9: memref<1x52xf32, #tpu.memory_space<vmem>>, %arg10: memref<8x52xf32, #tpu.memory_space<vmem>>) attributes {dimension_semantics = [], scalar_prefetch = 0 : i64, scratch_operands = 0 : i64, tpu.core_type = #tpu.core_type<tc>} {
    %c0 = arith.constant 0 : index
    %c0_0 = arith.constant 0 : index
    %0 = vector.load %arg0[%c0, %c0_0] : memref<8x16xf32, #tpu.memory_space<vmem>>, vector<8x16xf32>
    %c0_1 = arith.constant 0 : index
    %c0_2 = arith.constant 0 : index
    %1 = vector.load %arg2[%c0_1, %c0_2] : memref<16x128xf32, #tpu.memory_space<vmem>>, vector<16x128xf32>
    %cst = arith.constant dense<0.000000e+00> : vector<8x128xf32>
    %2 = tpu.matmul %0, %1, %cst {dimension_numbers = #tpu.dot_dimension_numbers<[1], [0], [0], [1], [0, 0, 1, 1], [], []>} : vector<8x16xf32>, vector<16x128xf32>, vector<8x128xf32> -> vector<8x128xf32>
    %cst_3 = arith.constant dense<0.000000e+00> : vector<128xf32>
    %3 = vector.multi_reduction <add>, %2, %cst_3 [0] : vector<8x128xf32> to vector<128xf32>
    %4 = vector.shape_cast %3 : vector<128xf32> to vector<1x128xf32>
    %cst_4 = arith.constant 8.000000e+00 : f32
    %5 = vector.broadcast %cst_4 : f32 to vector<1x128xf32>
    %6 = arith.divf %4, %5 : vector<1x128xf32>
    %7 = arith.mulf %2, %2 : vector<8x128xf32>
    %cst_5 = arith.constant dense<0.000000e+00> : vector<128xf32>
    %8 = vector.multi_reduction <add>, %7, %cst_5 [0] : vector<8x128xf32> to vector<128xf32>
    %9 = vector.shape_cast %8 : vector<128xf32> to vector<1x128xf32>
    %cst_6 = arith.constant 8.000000e+00 : f32
    %10 = vector.broadcast %cst_6 : f32 to vector<1x128xf32>
    %11 = arith.divf %9, %10 : vector<1x128xf32>
    %12 = arith.mulf %6, %6 : vector<1x128xf32>
    %13 = arith.subf %11, %12 : vector<1x128xf32>
    %cst_7 = arith.constant 0.000000e+00 : f32
    %14 = vector.broadcast %cst_7 : f32 to vector<1x128xf32>
    %15 = arith.maximumf %13, %14 : vector<1x128xf32>
    %c0_8 = arith.constant 0 : index
    %c0_9 = arith.constant 0 : index
    %16 = vector.load %arg4[%c0_8, %c0_9] : memref<1x128xf32, #tpu.memory_space<vmem>>, vector<1x128xf32>
    %cst_10 = arith.constant 9.99999974E-6 : f32
    %17 = vector.broadcast %cst_10 : f32 to vector<1x128xf32>
    %18 = arith.addf %15, %17 : vector<1x128xf32>
    %19 = math.rsqrt %18 : vector<1x128xf32>
    %20 = arith.mulf %16, %19 : vector<1x128xf32>
    %c0_11 = arith.constant 0 : index
    %c0_12 = arith.constant 0 : index
    %21 = vector.load %arg5[%c0_11, %c0_12] : memref<1x128xf32, #tpu.memory_space<vmem>>, vector<1x128xf32>
    %22 = arith.mulf %6, %20 : vector<1x128xf32>
    %23 = arith.subf %21, %22 : vector<1x128xf32>
    %24 = vector.broadcast %20 : vector<1x128xf32> to vector<8x128xf32>
    %25 = arith.mulf %2, %24 : vector<8x128xf32>
    %26 = vector.broadcast %23 : vector<1x128xf32> to vector<8x128xf32>
    %27 = arith.addf %25, %26 : vector<8x128xf32>
    %cst_13 = arith.constant 0.000000e+00 : f32
    %28 = vector.broadcast %cst_13 : f32 to vector<8x128xf32>
    %29 = arith.maximumf %27, %28 : vector<8x128xf32>
    %c0_14 = arith.constant 0 : index
    %c0_15 = arith.constant 0 : index
    %30 = vector.load %arg1[%c0_14, %c0_15] : memref<8x8xf32, #tpu.memory_space<vmem>>, vector<8x8xf32>
    %c0_16 = arith.constant 0 : index
    %c0_17 = arith.constant 0 : index
    %31 = vector.load %arg3[%c0_16, %c0_17] : memref<8x128xf32, #tpu.memory_space<vmem>>, vector<8x128xf32>
    %cst_18 = arith.constant dense<0.000000e+00> : vector<8x128xf32>
    %32 = tpu.matmul %30, %31, %cst_18 {dimension_numbers = #tpu.dot_dimension_numbers<[1], [0], [0], [1], [0, 0, 1, 1], [], []>} : vector<8x8xf32>, vector<8x128xf32>, vector<8x128xf32> -> vector<8x128xf32>
    %cst_19 = arith.constant dense<0.000000e+00> : vector<128xf32>
    %33 = vector.multi_reduction <add>, %32, %cst_19 [0] : vector<8x128xf32> to vector<128xf32>
    %34 = vector.shape_cast %33 : vector<128xf32> to vector<1x128xf32>
    %cst_20 = arith.constant 8.000000e+00 : f32
    %35 = vector.broadcast %cst_20 : f32 to vector<1x128xf32>
    %36 = arith.divf %34, %35 : vector<1x128xf32>
    %37 = arith.mulf %32, %32 : vector<8x128xf32>
    %cst_21 = arith.constant dense<0.000000e+00> : vector<128xf32>
    %38 = vector.multi_reduction <add>, %37, %cst_21 [0] : vector<8x128xf32> to vector<128xf32>
    %39 = vector.shape_cast %38 : vector<128xf32> to vector<1x128xf32>
    %cst_22 = arith.constant 8.000000e+00 : f32
    %40 = vector.broadcast %cst_22 : f32 to vector<1x128xf32>
    %41 = arith.divf %39, %40 : vector<1x128xf32>
    %42 = arith.mulf %36, %36 : vector<1x128xf32>
    %43 = arith.subf %41, %42 : vector<1x128xf32>
    %cst_23 = arith.constant 0.000000e+00 : f32
    %44 = vector.broadcast %cst_23 : f32 to vector<1x128xf32>
    %45 = arith.maximumf %43, %44 : vector<1x128xf32>
    %c0_24 = arith.constant 0 : index
    %c0_25 = arith.constant 0 : index
    %46 = vector.load %arg6[%c0_24, %c0_25] : memref<1x128xf32, #tpu.memory_space<vmem>>, vector<1x128xf32>
    %cst_26 = arith.constant 9.99999974E-6 : f32
    %47 = vector.broadcast %cst_26 : f32 to vector<1x128xf32>
    %48 = arith.addf %45, %47 : vector<1x128xf32>
    %49 = math.rsqrt %48 : vector<1x128xf32>
    %50 = arith.mulf %46, %49 : vector<1x128xf32>
    %c0_27 = arith.constant 0 : index
    %c0_28 = arith.constant 0 : index
    %51 = vector.load %arg7[%c0_27, %c0_28] : memref<1x128xf32, #tpu.memory_space<vmem>>, vector<1x128xf32>
    %52 = arith.mulf %36, %50 : vector<1x128xf32>
    %53 = arith.subf %51, %52 : vector<1x128xf32>
    %54 = vector.broadcast %50 : vector<1x128xf32> to vector<8x128xf32>
    %55 = arith.mulf %32, %54 : vector<8x128xf32>
    %56 = vector.broadcast %53 : vector<1x128xf32> to vector<8x128xf32>
    %57 = arith.addf %55, %56 : vector<8x128xf32>
    %cst_29 = arith.constant 0.000000e+00 : f32
    %58 = vector.broadcast %cst_29 : f32 to vector<8x128xf32>
    %59 = arith.maximumf %57, %58 : vector<8x128xf32>
    %60 = arith.addf %29, %59 : vector<8x128xf32>
    %c0_30 = arith.constant 0 : index
    %c0_31 = arith.constant 0 : index
    %61 = vector.load %arg8[%c0_30, %c0_31] : memref<128x52xf32, #tpu.memory_space<vmem>>, vector<128x52xf32>
    %cst_32 = arith.constant dense<0.000000e+00> : vector<8x52xf32>
    %62 = tpu.matmul %60, %61, %cst_32 {dimension_numbers = #tpu.dot_dimension_numbers<[1], [0], [0], [1], [0, 0, 1, 1], [], []>} : vector<8x128xf32>, vector<128x52xf32>, vector<8x52xf32> -> vector<8x52xf32>
    %c0_33 = arith.constant 0 : index
    %c0_34 = arith.constant 0 : index
    %63 = vector.load %arg9[%c0_33, %c0_34] : memref<1x52xf32, #tpu.memory_space<vmem>>, vector<1x52xf32>
    %64 = vector.broadcast %63 : vector<1x52xf32> to vector<8x52xf32>
    %65 = arith.addf %62, %64 : vector<8x52xf32>
    %c0_35 = arith.constant 0 : index
    %c0_36 = arith.constant 0 : index
    %66 = vector.load %arg10[%c0_35, %c0_36] : memref<8x52xf32, #tpu.memory_space<vmem>>, vector<8x52xf32>
    tpu.vector_store %arg10[%c0_35, %c0_36], %65 {strides = array<i32>} : memref<8x52xf32, #tpu.memory_space<vmem>>, vector<8x52xf32>,
    return
  }
}

</mosaic_0001>

<bundles_post_ra>
// kernel: tpu_custom_call.1
= control target key start
LH: loop header
LB: loop body
LE: loop exit
PB: predicated region body
PF: predicated region fallthrough
CT: control target
= control target key end

     0   :  { %v511_v2 = vmov 0.0|0.0   ;;  %vm512_vm0 = vmmov 0   ;;  %v513_v4 = vmov 0.0   ;;  %s660_s0 = inlined_call_operand.vmem [shape: f32[8,16], index: 0, kind: input, shape index: {}]   ;;  %s661_s1 = inlined_call_operand.vmem [shape: f32[8,8], index: 1, kind: input, shape index: {}]   ;;  %s662_s2 = inlined_call_operand.vmem [shape: f32[16,128], index: 2, kind: input, shape index: {}]   ;;  %s663_s3 = inlined_call_operand.vmem [shape: f32[8,128], index: 3, kind: input, shape index: {}]   ;;  %s664_s4 = inlined_call_operand.vmem [shape: f32[1,128], index: 4, kind: input, shape index: {}]   ;;  %s665_s5 = inlined_call_operand.vmem [shape: f32[1,128], index: 5, kind: input, shape index: {}]   ;;  %s666_s6 = inlined_call_operand.vmem [shape: f32[1,128], index: 6, kind: input, shape index: {}]   ;;  %s667_s7 = inlined_call_operand.vmem [shape: f32[1,128], index: 7, kind: input, shape index: {}]   ;;  %s668_s8 = inlined_call_operand.vmem [shape: f32[128,52], index: 8, kind: input, shape index: {}]   ;;  %s669_s9 = inlined_call_operand.vmem [shape: f32[1,52], index: 9, kind: input, shape index: {}]   ;;  %s670_s10 = inlined_call_operand.hbm [shape: f32[8,52], index: 10, kind: output, shape index: {}]  }
   0x1   :  { %v37_v0 = vld [vmem:[%s662_s2] sm:$0xff]  ;;  %v38_v1 = vld [vmem:[%s662_s2 + $0x8] sm:$0xff]  ;;  %452 = vmatprep.subr.bf16.mxu0 %v511_v2  ;;  %409 = vmatprep.mubr.msk.f32.mxu0 %vm512_vm0, %v513_v4 }
   0x2   :  { %v453_v3 = vpack.c.bf16 %v38_v1, %v37_v0 }
   0x3   :  { %15 = vsyncpa [#allocation3], 0  ;;  %455 = vmatprep.subr.bf16.mxu1 %v511_v2  ;;  %449 = vmatprep.mubr.msk.f32.mxu1 %vm512_vm0, %v513_v4  ;;  %v36_v5 = vld [vmem:[%s660_s0] sm:$0xff]  ;;  %vm39_vm1 = vcmask 130048   ;;  %vm156_vm2 = vcmask 64512   ;;  %v272_v9 = vld [vmem:[%s668_s8 + $0x8] sm:$0xff] }
   0x4   :  { %454 = vmatpush3.bf16.msra.mxu0 %v453_v3  ;;  %v155_v6 = vld [vmem:[%s663_s3] sm:$0xff]  ;;  %v273_v11 = vld [vmem:[%s668_s8 + $0x10] sm:$0xff]  ;;  %v274_v12 = vld [vmem:[%s668_s8 + $0x18] sm:$0xff]  ;;  %vm364_vm3 = vcmask 424960  }
   0x5   :  { %412 = vmatprep.subr.mxu0 %v513_v4  ;;  %v154_v7 = vld [vmem:[%s661_s1] sm:$0xff]  ;;  %v459_v13 = vpack.c.bf16 %v274_v12, %v273_v11  ;;  %v276_v15 = vld [vmem:[%s668_s8 + $0x28] sm:$0xff]  ;;  %v277_v17 = vld [vmem:[%s668_s8 + $0x30] sm:$0xff] }
   0x6   :  { %v271_v8 = vld [vmem:[%s668_s8] sm:$0xff]  ;;  %v278_v18 = vld [vmem:[%s668_s8 + $0x38] sm:$0xff]  ;;  %v280_v21 = vld [vmem:[%s668_s8 + $0x48] sm:$0xff] }
   0x7   :  { %410 = vmatmul.mubr.msk.f32.vlgmr.msra.gmra.mrb[0].mxu0 %vm39_vm1, %v36_v5  ;;  %v456_v10 = vpack.c.bf16 %v272_v9, %v271_v8  ;;  %v275_v14 = vld [vmem:[%s668_s8 + $0x20] sm:$0xff]  ;;  %v465_v19 = vpack.c.bf16 %v278_v18, %v277_v17  ;;  %v281_v23 = vld [vmem:[%s668_s8 + $0x50] sm:$0xff]  ;;  %v282_v24 = vld [vmem:[%s668_s8 + $0x58] sm:$0xff] }
   0x8   :  { %413 = vmatpush3.msra.mxu0 %v155_v6  ;;  %414 = vmatprep.mubr.msk.f32.mxu0 %vm512_vm0, %v513_v4  ;;  %v462_v16 = vpack.c.bf16 %v276_v15, %v275_v14  ;;  %v279_v20 = vld [vmem:[%s668_s8 + $0x40] sm:$0xff]  ;;  %v471_v25 = vpack.c.bf16 %v282_v24, %v281_v23  ;;  %v284_v27 = vld [vmem:[%s668_s8 + $0x68] sm:$0xff]  ;;  %v285_v28 = vld [vmem:[%s668_s8 + $0x70] sm:$0xff] }
   0x9   :  { %457 = vmatpush3.bf16.msra.mxu1 %v456_v10  ;;  %v468_v22 = vpack.c.bf16 %v280_v21, %v279_v20  ;;  %v283_v26 = vld [vmem:[%s668_s8 + $0x60] sm:$0xff]  ;;  %v286_v30 = vld [vmem:[%s668_s8 + $0x78] sm:$0xff]  ;;  %v140_v10 = vlaneseq }
   0xa   :  { %458 = vmatprep.subr.bf16.mxu1 %v511_v2  ;;  %v474_v29 = vpack.c.bf16 %v284_v27, %v283_v26  ;;  %v477_v31 = vpack.c.bf16 %v286_v30, %v285_v28  ;;  %v132_v12 = vld [vmem:[%s664_s4] sm:$0x1] }
   0xb   :  { %415 = vmatmul.mubr.msk.f32.vlgmr.msra.gmra.mrb[2].mxu0 %vm156_vm2, %v154_v7  ;;  %v141_v11 = vshrl.u32 %v140_v10, 7  ;;  %v136_v17 = vld [vmem:[%s665_s5] sm:$0x1] }
   0xc   :  { %v252_v23 = vld [vmem:[%s667_s7] sm:$0x1] }
   0xd   :  { %460 = vmatpush3.bf16.msra.mxu1 %v459_v13  ;;  %v142_v15 = vsub.s32 0, %v141_v11 }
   0xe   :  { %461 = vmatprep.subr.bf16.mxu1 %v511_v2 }
  0x11   :  { %463 = vmatpush3.bf16.msra.mxu1 %v462_v16  ;;  %v248_v16 = vld [vmem:[%s666_s6] sm:$0x1]  ;;  %s514_s6 = smov [#allocation2]  }
  0x12   :  { %464 = vmatprep.subr.bf16.mxu1 %v511_v2  ;;  %s372_s14 = sshll.u32 %s514_s6, 4  ;;  %s373_s14 = int_to_ptr.vmem [resolvable:$true] %s372_s14 }
  0x13   :  { %s487_s7 = scalar_lea.vmem %s373_s14, 128  ;;  %p492_p1 = scmp.lt.s32.totalorder %s373_s14, %s373_s14 }
  0x14   :  { %p488_p0 = scmp.ne.s32.totalorder %s373_s14, %s487_s7  ;;  %p493_p2 = scmp.lt.s32.totalorder %s487_s7, %s487_s7 }
  0x15   :  { %466 = vmatpush3.bf16.msra.mxu1 %v465_v19 }
  0x16   :  { %467 = vmatprep.subr.bf16.mxu1 %v511_v2  ;;  %p494_p3 = por %p493_p2, %p492_p1 }
  0x18   :  { %p495_p4 = pnand %p494_p3, %p488_p0 }
  0x19   :  { %469 = vmatpush3.bf16.msra.mxu1 %v468_v22 }
  0x1a   :  { %470 = vmatprep.subr.bf16.mxu1 %v511_v2 }
  0x1d   :  { %472 = vmatpush3.bf16.msra.mxu1 %v471_v25 }
  0x1e   :  { %473 = vmatprep.subr.bf16.mxu1 %v511_v2 }
  0x21   :  { %475 = vmatpush3.bf16.msra.mxu1 %v474_v29 }
  0x22   :  { %476 = vmatprep.subr.bf16.mxu1 %v511_v2 }
  0x25   :  { %478 = vmatpush3.bf16.msra.mxu1 %v477_v31 }
  0xda   :  { %v109_v32 = vpop.f32.mrb[0].mxu0 }
  0xdb   :  { %v113_v33 = vrot.slane %v109_v32, 4  ;;  %v121_v34 = vmul.f32 %v109_v32, %v109_v32  ;;  %v411_v35 = vpop.f32.mrb[1].mxu0 }
  0xdd   :  { %v114_v36 = vadd.f32 %v113_v33, %v109_v32  ;;  %v122_v37 = vrot.slane %v121_v34, 4 }
  0xde   :  { %v226_v38 = vpop.f32.mrb[2].mxu0 }
  0xdf   :  { %v115_v39 = vrot.slane %v114_v36, 2  ;;  %v123_v40 = vadd.f32 %v122_v37, %v121_v34  ;;  %v230_v41 = vrot.slane %v226_v38, 4  ;;  %v237_v42 = vmul.f32 %v226_v38, %v226_v38  ;;  %v416_v43 = vpop.f32.mrb[3].mxu0  ;;  %v382_v37 = vld [vmem:[%s669_s9] ss:$0 sm:$0xff] }
  0xe1   :  { %v116_v44 = vadd.f32 %v115_v39, %v114_v36  ;;  %v124_v45 = vrot.slane %v123_v40, 2  ;;  %v231_v46 = vadd.f32 %v230_v41, %v226_v38  ;;  %v238_v47 = vrot.slane %v237_v42, 4 }
  0xe3   :  { %v117_v48 = vrot.slane %v116_v44, 1  ;;  %v125_v49 = vadd.f32 %v124_v45, %v123_v40  ;;  %v232_v50 = vrot.slane %v231_v46, 2  ;;  %v239_v51 = vadd.f32 %v238_v47, %v237_v42 }
  0xe5   :  { %v118_v52 = vadd.f32 %v117_v48, %v116_v44  ;;  %v126_v53 = vrot.slane %v125_v49, 1  ;;  %v233_v54 = vadd.f32 %v232_v50, %v231_v46  ;;  %v240_v55 = vrot.slane %v239_v51, 2 }
  0xe7   :  { %v120_v56 = vmul.f32 0.125, %v118_v52  ;;  %v127_v57 = vadd.f32 %v126_v53, %v125_v49  ;;  %v234_v58 = vrot.slane %v233_v54, 1  ;;  %v241_v59 = vadd.f32 %v240_v55, %v239_v51 }
  0xe9   :  { %v128_v60 = vmul.f32 0.125, %v127_v57  ;;  %v129_v61 = vmul.f32 %v120_v56, %v120_v56  ;;  %v235_v62 = vadd.f32 %v234_v58, %v233_v54  ;;  %v242_v63 = vrot.slane %v241_v59, 1 }
  0xeb   :  { %v130_v0 = vsub.f32 %v128_v60, %v129_v61  ;;  %v236_v1 = vmul.f32 0.125, %v235_v62  ;;  %v243_v2 = vadd.f32 %v242_v63, %v241_v59 }
  0xed   :  { %v131_v3 = vmax.f32 %v130_v0, 0.0  ;;  %v244_v4 = vmul.f32 0.125, %v243_v2  ;;  %v245_v5 = vmul.f32 %v236_v1, %v236_v1 }
  0xef   :  { %v133_v6 = vadd.f32 1e-05, %v131_v3  ;;  %v246_v7 = vsub.f32 %v244_v4, %v245_v5 }
  0xf1   :  { %483 = vrsqrt.f32 %v133_v6  ;;  %v247_v8 = vmax.f32 %v246_v7, 0.0 }
  0xf3   :  { %v249_v9 = vadd.f32 1e-05, %v247_v8 }
  0xf5   :  { %485 = vrsqrt.f32 %v249_v9 }
  0xfb   :  { %v484_v13 = vpop.eup %483 }
  0xfc   :  { %v135_v14 = vmul.f32 %v484_v13, %v132_v12 }
  0xfe   :  { %v137_v18 = vmul.f32 %v135_v14, %v120_v56  ;;  %v143_v20 = vrot.slane %v135_v14, %v142_v15 }
  0xff   :  { %v486_v19 = vpop.eup %485 }
 0x100   :  { %v251_v21 = vmul.f32 %v486_v19, %v248_v16  ;;  %v138_v22 = vsub.f32 %v136_v17, %v137_v18  ;;  %v145_v27 = vmul.f32 %v143_v20, %v109_v32 }
 0x102   :  { %v253_v24 = vmul.f32 %v251_v21, %v236_v1  ;;  %v259_v25 = vrot.slane %v251_v21, %v142_v15  ;;  %v150_v26 = vrot.slane %v138_v22, %v142_v15 }
 0x104   :  { %v254_v28 = vsub.f32 %v252_v23, %v253_v24  ;;  %v261_v29 = vmul.f32 %v259_v25, %v226_v38  ;;  %v152_v30 = vadd.f32 %v150_v26, %v145_v27 }
 0x106   :  { %v266_v31 = vrot.slane %v254_v28, %v142_v15  ;;  %v153_v34 = vmax.f32 %v152_v30, 0.0 }
 0x108   :  { %v268_v33 = vadd.f32 %v266_v31, %v261_v29 }
 0x10a   :  { %v269_v35 = vmax.f32 %v268_v33, 0.0 }
 0x10c   :  { %v270_v36 = vadd.f32 %v269_v35, %v153_v34 }
 0x10e   :  { %450 = vmatmul.mubr.f32.vlgmr.msra.gmra.mrb[0].mxu1 %v270_v36 }
 0x1e1   :  { %v360_v39 = vpop.f32.mrb[0].mxu1 }
 0x1e2   :  { %v361_v40 = vadd.f32 %v382_v37, %v360_v39  ;;  %v451_v41 = vpop.f32.mrb[1].mxu1 }
 0x1e4   :  { %365 = vst.msk [vmem:[#allocation2] sm:$0xff] %vm364_vm3, %v361_v40 }
 0x1e5   :  { %498 = shalt.err (!%p495_p4)
}
 0x1e6   :  { %s499_s17 = scalar_lea.hbm %s670_s10, 128 }
 0x1e7   :  { %p500_p5 = scmp.ne.s32.totalorder %s670_s10, %s499_s17  ;;  %p503_p6 = scmp.lt.u32.totalorder %s499_s17, %s670_s10 }
 0x1e9   :  { %p505_p7 = pnand %p503_p6, %p500_p5 }
 0x1eb   :  { %508 = shalt.err (!%p505_p7)
}
 0x1ec   :  { %375 = dma.vmem_to_hbm [thread:$0]  %s373_s14, 128, %s670_s10, [#allocation3]  }
 0x1ed   :  { %509 = dma.done.wait [#allocation3], 128  }
 0x1ee   :  { %510 = vsyncadd [#allocation3], 4294967168 }
 0x1ef   :  { %379 = vsyncpa [#allocation3], 1 }

</bundles_post_ra>
